<compile_context>
chip_gen: v6e
topology: v6e:2x2x1
jax: 0.10.0
libtpu: 0.0.40
codegen_flags: <defaults>
</compile_context>

<pallas_src>
import functools

import jax
import jax.numpy as jnp
from jax.experimental import pallas as pl
from jax.experimental.pallas import tpu as pltpu


SMOOTHING = 0.1
CONFIDENCE = 1.0 - SMOOTHING
IGNORE_INDEX = -100

# Per-buffer budget for the streamed logits tile (double-buffered by the
# BlockSpec pipeline).  ~2 MiB/buffer is ~85% of the measured HBM roofline and
# keeps total scoped VMEM (2 input buffers + f32 temporaries) comfortably under
# the 32 MiB limit on every generation, including v7x (64 MiB physical).
_TILE_BYTES = 2 * 1024 * 1024
_VMEM_LIMIT_BYTES = 32 * 1024 * 1024


def _ls_ce_kernel(logits_ref, target_ref, out_ref, *, n_rows, block_rows, n_classes):
    i = pl.program_id(0)

    x = logits_ref[...].astype(jnp.float32)          # (BM, C) f32 compute
    t = target_ref[...]                              # (BM, 1) int32

    # Valid rows: real (in-range) rows with a non-ignored target.  The global
    # row test guards the ragged tail block, whose out-of-range logits rows
    # contain unspecified data (logits are streamed unpadded).
    row = jax.lax.broadcasted_iota(jnp.int32, (block_rows, 1), 0) + i * block_rows
    valid = (t != IGNORE_INDEX) & (row < n_rows)      # (BM, 1) bool

    # Numerically-stable log-sum-exp over the class (lane) axis.
    m = jnp.max(x, axis=-1, keepdims=True)            # (BM, 1)
    shifted = x - m                                    # (BM, C), <= 0
    lse = jnp.log(jnp.sum(jnp.exp(shifted), axis=-1, keepdims=True))  # (BM, 1)

    # Fused weighted reduction (CONFIDENCE + SMOOTHING == 1):
    #   loss = CONF*(lse - shifted[t]) + SMOOTH*(lse - mean(shifted))
    #        = lse - sum_c(shifted_c * (CONF*onehot_c + SMOOTH/C))
    col = jax.lax.broadcasted_iota(jnp.int32, (block_rows, n_classes), 1)
    w = CONFIDENCE * (col == t).astype(jnp.float32) + (SMOOTHING / n_classes)
    weighted = jnp.sum(shifted * w, axis=-1, keepdims=True)            # (BM, 1)

    loss = jnp.where(valid, lse - weighted, 0.0)       # (BM, 1)

    # One (1, 1, 2) partial per block: [loss_sum, valid_count].  Per-block
    # counts are <= BM, so they are exact in f32.
    loss_sum = jnp.sum(loss)
    count = jnp.sum(valid.astype(jnp.float32))
    lane = jax.lax.broadcasted_iota(jnp.int32, (1, 1, 2), 2)
    out_ref[...] = jnp.where(lane == 0, loss_sum, count)


def _choose_block_rows(n_rows, n_classes, dtype_bytes):
    """Row-tile height sized from the per-buffer VMEM budget (no fixed cap)."""
    sublane = 16 if dtype_bytes == 2 else 8

    # TODO(synk): for vocabularies where even a single sublane-high tile blows
    # the VMEM budget, add a class-axis grid dim with an online (flash-style)
    # max / sum-exp reduction instead of widening the tile.
    if sublane * n_classes * dtype_bytes * 6 > _VMEM_LIMIT_BYTES:
        raise NotImplementedError(
            "class dimension too large for a single row-tile; needs the "
            "class-axis (online-LSE) split")

    bm = _TILE_BYTES // max(1, n_classes * dtype_bytes)
    bm = max(sublane, (bm // sublane) * sublane)
    # Never tile taller than the (sublane-rounded) problem itself.
    n_rounded = ((n_rows + sublane - 1) // sublane) * sublane
    bm = min(bm, n_rounded)
    # v7x megacore: ensure the "parallel" grid axis has >= 2 blocks whenever the
    # problem spans more than one sublane of rows, so both TensorCores get work.
    if n_rows > sublane and -(-n_rows // bm) < 2:
        half = (((n_rows + 1) // 2) + sublane - 1) // sublane * sublane
        bm = max(sublane, min(bm, half))
    return bm


def label_smoothing_cross_entropy(logits, target):
    """logits: (N, C) float (f32 or bf16); target: (N,) int. Scalar mean loss."""
    n_rows, n_classes = logits.shape
    dtype_bytes = jnp.dtype(logits.dtype).itemsize
    bm = _choose_block_rows(n_rows, n_classes, dtype_bytes)
    num_blocks = -(-n_rows // bm)

    # Only the tiny target vector is padded (with IGNORE_INDEX) so its blocks
    # are always in range; logits stream unpadded (no extra HBM round-trip) and
    # the ragged tail block is masked in-kernel via the global row index.
    n_pad = num_blocks * bm
    target_i32 = target.astype(jnp.int32)
    if n_pad != n_rows:
        target_i32 = jnp.pad(target_i32, (0, n_pad - n_rows),
                             constant_values=IGNORE_INDEX)
    target2d = target_i32.reshape(n_pad, 1)

    kernel = functools.partial(_ls_ce_kernel, n_rows=n_rows,
                               block_rows=bm, n_classes=n_classes)

    partials = pl.pallas_call(
        kernel,
        out_shape=jax.ShapeDtypeStruct((num_blocks, 1, 2), jnp.float32),
        grid_spec=pltpu.PrefetchScalarGridSpec(
            num_scalar_prefetch=0,
            grid=(num_blocks,),
            in_specs=[
                pl.BlockSpec((bm, n_classes), lambda i: (i, 0)),
                pl.BlockSpec((bm, 1), lambda i: (i, 0)),
            ],
            out_specs=pl.BlockSpec((1, 1, 2), lambda i: (i, 0, 0)),
        ),
        compiler_params=pltpu.CompilerParams(
            dimension_semantics=("parallel",),
            vmem_limit_bytes=_VMEM_LIMIT_BYTES,
        ),
    )(logits, target2d)

    loss_sum = jnp.sum(partials[:, 0, 0])
    # NOTE: per-block counts are exact in f32; their sum is exact up to ~2^24
    # valid rows (switch to int32 partials if N can exceed that).
    count = jnp.sum(partials[:, 0, 1])
    # Guard against an all-ignore_index batch (reference would produce NaN).
    return jnp.where(count > 0, loss_sum / jnp.maximum(count, 1.0), 0.0)


def _reference(logits, target):
    mask = target != IGNORE_INDEX
    logits_v = logits[mask].astype(jnp.float32)
    target_v = target[mask]
    log_probs = jax.nn.log_softmax(logits_v, axis=-1)
    nll = -jnp.take_along_axis(log_probs, target_v[:, None], axis=-1)[:, 0]
    smooth = -jnp.mean(log_probs, axis=-1)
    return jnp.mean(CONFIDENCE * nll + SMOOTHING * smooth)


if __name__ == "__main__":
    key = jax.random.PRNGKey(0)
    k1, k2, k3, k4 = jax.random.split(key, 4)

    # f32 case; N deliberately not a multiple of the row tile so the
    # ragged-tail (unpadded-logits) path is exercised.
    N, C = 13, 32
    logits = jax.random.normal(k1, (N, C), dtype=jnp.float32)
    target = jax.random.randint(k2, (N,), 0, C, dtype=jnp.int32)
    target = target.at[3].set(IGNORE_INDEX).at[10].set(IGNORE_INDEX)

    out = jax.block_until_ready(label_smoothing_cross_entropy(logits, target))
    ref = _reference(logits, target)
    assert jnp.allclose(out, ref, rtol=1e-5, atol=1e-5), (out, ref)

    # bf16 input path (f32 softmax math in-kernel), also ragged.
    N2, C2 = 37, 96
    logits2 = jax.random.normal(k3, (N2, C2), dtype=jnp.float32).astype(jnp.bfloat16)
    target2 = jax.random.randint(k4, (N2,), 0, C2, dtype=jnp.int32)
    target2 = target2.at[0].set(IGNORE_INDEX)

    out2 = jax.block_until_ready(label_smoothing_cross_entropy(logits2, target2))
    ref2 = _reference(logits2, target2)
    assert jnp.allclose(out2, ref2, rtol=2e-2, atol=2e-2), (out2, ref2)

    print("KERNEL_OK")
</pallas_src>

<mosaic_0001>
module attributes {stable_mosaic.version = 11 : i64} {
  func.func @_ls_ce_kernel(%arg0: i32, %arg1: memref<8x32xf32, #tpu.memory_space<vmem>>, %arg2: memref<8x1xi32, #tpu.memory_space<vmem>>, %arg3: memref<1x1x2xf32, #tpu.memory_space<vmem>>) attributes {dimension_semantics = [#tpu.dimension_semantics<parallel>], iteration_bounds = array<i64: 2>, scalar_prefetch = 0 : i64, scratch_operands = 0 : i64, tpu.core_type = #tpu.core_type<tc>, window_params = [{transform_indices = @transform_0, window_bounds = array<i64: 8, 32>}, {transform_indices = @transform_1, window_bounds = array<i64: 8, 1>}, {transform_indices = @transform_2, window_bounds = array<i64: 1, 1, 2>}]} {
    %c0 = arith.constant 0 : index
    %c0_0 = arith.constant 0 : index
    %0 = vector.load %arg1[%c0, %c0_0] : memref<8x32xf32, #tpu.memory_space<vmem>>, vector<8x32xf32>
    %c0_1 = arith.constant 0 : index
    %c0_2 = arith.constant 0 : index
    %1 = vector.load %arg2[%c0_1, %c0_2] : memref<8x1xi32, #tpu.memory_space<vmem>>, vector<8x1xi32>
    %2 = tpu.iota {dimensions = array<i32: 0>} : vector<8x1xi32>
    %c8_i32 = arith.constant 8 : i32
    %3 = arith.muli %arg0, %c8_i32 : i32
    %4 = vector.broadcast %3 : i32 to vector<8x1xi32>
    %5 = arith.addi %2, %4 : vector<8x1xi32>
    %c-100_i32 = arith.constant -100 : i32
    %6 = vector.broadcast %c-100_i32 : i32 to vector<8x1xi32>
    %7 = arith.cmpi ne, %1, %6 : vector<8x1xi32>
    %c13_i32 = arith.constant 13 : i32
    %8 = vector.broadcast %c13_i32 : i32 to vector<8x1xi32>
    %9 = arith.cmpi slt, %5, %8 : vector<8x1xi32>
    %10 = arith.andi %7, %9 : vector<8x1xi1>
    %cst = arith.constant dense<0xFF800000> : vector<8xf32>
    %11 = vector.multi_reduction <maximumf>, %0, %cst [1] : vector<8x32xf32> to vector<8xf32>
    %12 = vector.shape_cast %11 : vector<8xf32> to vector<8x1xf32>
    %13 = vector.broadcast %12 : vector<8x1xf32> to vector<8x32xf32>
    %14 = arith.subf %0, %13 : vector<8x32xf32>
    %15 = math.exp %14 : vector<8x32xf32>
    %cst_3 = arith.constant dense<0.000000e+00> : vector<8xf32>
    %16 = vector.multi_reduction <add>, %15, %cst_3 [1] : vector<8x32xf32> to vector<8xf32>
    %17 = vector.shape_cast %16 : vector<8xf32> to vector<8x1xf32>
    %18 = math.log %17 : vector<8x1xf32>
    %19 = tpu.iota {dimensions = array<i32: 1>} : vector<8x32xi32>
    %20 = vector.broadcast %1 : vector<8x1xi32> to vector<8x32xi32>
    %21 = arith.cmpi eq, %19, %20 : vector<8x32xi32>
    %22 = arith.extui %21 : vector<8x32xi1> to vector<8x32xi32>
    %23 = arith.sitofp %22 : vector<8x32xi32> to vector<8x32xf32>
    %cst_4 = arith.constant 0.899999976 : f32
    %24 = vector.broadcast %cst_4 : f32 to vector<8x32xf32>
    %25 = arith.mulf %24, %23 : vector<8x32xf32>
    %cst_5 = arith.constant 3.125000e-03 : f32
    %26 = vector.broadcast %cst_5 : f32 to vector<8x32xf32>
    %27 = arith.addf %25, %26 : vector<8x32xf32>
    %28 = arith.mulf %14, %27 : vector<8x32xf32>
    %cst_6 = arith.constant dense<0.000000e+00> : vector<8xf32>
    %29 = vector.multi_reduction <add>, %28, %cst_6 [1] : vector<8x32xf32> to vector<8xf32>
    %30 = vector.shape_cast %29 : vector<8xf32> to vector<8x1xf32>
    %31 = arith.subf %18, %30 : vector<8x1xf32>
    %cst_7 = arith.constant 0.000000e+00 : f32
    %32 = vector.broadcast %cst_7 : f32 to vector<8x1xf32>
    %33 = arith.select %10, %31, %32 : vector<8x1xi1>, vector<8x1xf32>
    %34 = vector.shape_cast %33 : vector<8x1xf32> to vector<1x8x1xf32>
    %cst_8 = arith.constant dense<0.000000e+00> : vector<1xf32>
    %35 = vector.multi_reduction <add>, %34, %cst_8 [1, 2] : vector<1x8x1xf32> to vector<1xf32>
    %36 = vector.shape_cast %35 : vector<1xf32> to vector<1x1x1xf32>
    %37 = vector.extract %36[0, 0, 0] : f32 from vector<1x1x1xf32>
    %38 = arith.extui %10 : vector<8x1xi1> to vector<8x1xi32>
    %39 = arith.sitofp %38 : vector<8x1xi32> to vector<8x1xf32>
    %40 = vector.shape_cast %39 : vector<8x1xf32> to vector<1x8x1xf32>
    %cst_9 = arith.constant dense<0.000000e+00> : vector<1xf32>
    %41 = vector.multi_reduction <add>, %40, %cst_9 [1, 2] : vector<1x8x1xf32> to vector<1xf32>
    %42 = vector.shape_cast %41 : vector<1xf32> to vector<1x1x1xf32>
    %43 = vector.extract %42[0, 0, 0] : f32 from vector<1x1x1xf32>
    %44 = tpu.iota {dimensions = array<i32: 2>} : vector<1x1x2xi32>
    %c0_i32 = arith.constant 0 : i32
    %45 = vector.broadcast %c0_i32 : i32 to vector<1x1x2xi32>
    %46 = arith.cmpi eq, %44, %45 : vector<1x1x2xi32>
    %47 = vector.broadcast %37 : f32 to vector<1x1x2xf32>
    %48 = vector.broadcast %43 : f32 to vector<1x1x2xf32>
    %49 = arith.select %46, %47, %48 : vector<1x1x2xi1>, vector<1x1x2xf32>
    %c0_10 = arith.constant 0 : index
    %c0_11 = arith.constant 0 : index
    %c0_12 = arith.constant 0 : index
    %50 = vector.load %arg3[%c0_10, %c0_11, %c0_12] : memref<1x1x2xf32, #tpu.memory_space<vmem>>, vector<1x1x2xf32>
    tpu.vector_store %arg3[%c0_10, %c0_11, %c0_12], %49 {strides = array<i32>} : memref<1x1x2xf32, #tpu.memory_space<vmem>>, vector<1x1x2xf32>,
    return
  }
  func.func @transform_0(%arg0: i32) -> (i32, i32) {
    %c0_i32 = arith.constant 0 : i32
    %c0_i32_0 = arith.constant 0 : i32
    return %arg0, %c0_i32 : i32, i32
  }
  func.func @transform_1(%arg0: i32) -> (i32, i32) {
    %c0_i32 = arith.constant 0 : i32
    %c0_i32_0 = arith.constant 0 : i32
    return %arg0, %c0_i32 : i32, i32
  }
  func.func @transform_2(%arg0: i32) -> (i32, i32, i32) {
    %c0_i32 = arith.constant 0 : i32
    %c0_i32_0 = arith.constant 0 : i32
    %c0_i32_1 = arith.constant 0 : i32
    return %arg0, %c0_i32, %c0_i32_0 : i32, i32, i32
  }
}

</mosaic_0001>

<bundles_post_ra>
// kernel: tpu_custom_call.1
= control target key start
LH: loop header
LB: loop body
LE: loop exit
PB: predicated region body
PF: predicated region fallthrough
CT: control target
= control target key end

     0   :  { %7 = vsyncpa [#allocation3], 0  ;;  %s548_s0 = inlined_call_operand.vmem [shape: f32[13,32], index: 0, kind: input, shape index: {}]   ;;  %s549_s1 = inlined_call_operand.vmem [shape: s32[16,1], index: 1, kind: input, shape index: {}]   ;;  %s550_s2 = inlined_call_operand.hbm [shape: f32[2,1,2], index: 2, kind: output, shape index: {}]  }
   0x1   :  { %9 = vsyncpa [#allocation3 + $0x1], 0  ;;  %s444_s9 = smov 0   ;;  %s446_s10 = smov 0  }
   0x2   :  { %s448_s11 = smov 0   ;;  %s450_s12 = smov 0  }
   0x3 LB: > { %s465_s13 = sadd.s32 4294967295, %s424_s12   ;;  %s302_s14 = sadd.s32 4294967294, %s424_s12   ;;  %s424_s12 = sphi %s450_s12, %s556_s12   ;;  %s420_s11 = sphi %s448_s11, %s555_s11   ;;  %s416_s10 = sphi %s446_s10, %s554_s10   ;;  %s412_s9 = sphi %s444_s9, %s553_s9  }
   0x4   : > { %s469_s15 = sadd.s32 1, %s424_s12   ;;  %s74_s16 = sadd.s32 1, %s420_s11 }
   0x5   : > { %s71_s17 = ssub.s32 %s424_s12, %s469_s15  ;;  %p84_p0 = scmp.ne.s32.totalorder %s420_s11, %s416_s10 }
   0x6   : > { %p72_p1 = scmp.eq.s32.totalorder %s71_s17, 0  ;;  %p85_p2 = scmp.eq.s32.totalorder %s465_s13, 1 }
   0x7   : > { %p90_p3 = scmp.ne.s32.totalorder %s416_s10, %s412_s9  ;;  %p91_p4 = scmp.eq.s32.totalorder %s302_s14, 1 }
   0x8   : > { %s480_s18 = scalar_select %p72_p1, %s420_s11, %s74_s16  }
   0x9   : > { %p482_p5 = por %p85_p2, %p84_p0  ;;  %p486_p6 = por %p91_p4, %p90_p3 }
   0xa   : > { %p305_p7 = scmp.ge.s32.totalorder %s424_s12, 1  ;;  %p123_p8 = scmp.lt.s32.totalorder %s424_s12, 3 }
   0xc   : > { %p124_p9 = pnand %p305_p7, %p123_p8 }
   0xd   : > { %p147_p10 = scmp.lt.s32.totalorder (!%p124_p9), %s465_s13, 1  ;;  %s308_s29 = sshll.u32 (!%p124_p9), %s465_s13, 3 }
   0xe   : > { %127 = sbr.rel (%p124_p9) target bundleno = 559 (0x22f), region = 28  ;;  %s145_s30 = sand.u32 (!%p124_p9), 1, %s416_s10  }
   0xf   : > { %s311_s3 = sshll.u32 (!%p124_p9), %s465_s13, 4  ;;  %s146_s5 = scalar_lea.vmem (!%p124_p9), [#allocation2], %s145_s30 }
  0x10   : > { %s235_s6 = sshll.u32 (!%p124_p9), %s146_s5, 4  ;;  %s513_s16 = scalar_lea.hbm (!%p124_p9), %s550_s2, %s311_s3  ;;  %s236_s6 = int_to_ptr.vmem [resolvable:$true] %s235_s6 }
  0x11   : > { %s223_s17 = scalar_lea.sflag (!%p124_p9), [#allocation3], %s145_s30 }
  0x13   : > { %v426_v0 = vmov 0   ;;  %s148_s21 = scalar_select %p147_p10, %s465_s13, 1  ;;  %vm165_vm0 = vcmask 261120   ;;  %v157_v6 = vlaneseq  ;;  %v427_v10 = vmov 0.0  }
  0x14   : > { %359 = vset.pattern.permute.xlu0 %v426_v0  ;;  %v160_v19 = vstv %s308_s29  ;;  %vm193_vm5 = vcmask 7168   ;;  %vm220_vm7 = vcmask 8192   ;;  %s364_s13 = scalar_lea.vmem %s236_s6, 16 }
  0x15   : > { %s306_s22 = sshll.u32 %s148_s21, 3  ;;  %v501_v8 = vand.u32 127, %v157_v6  ;;  %v158_v18 = vshrl.u32 %v157_v6, 7  ;;  %p365_p11 = scmp.ne.s32.totalorder %s236_s6, %s364_s13 }
  0x16   : > { %s150_s25 = scalar_lea.vmem %s548_s0, %s306_s22  ;;  %s154_s28 = scalar_lea.vmem %s549_s1, %s306_s22 }
  0x17   : > { %v155_v1 = vld [vmem:[%s150_s25] sm:$0xff]  ;;  %v161_v20 = vadd.s32 %v160_v19, %v158_v18  ;;  %vm216_vm6 = vcmp.eq.s32.totalorder %v501_v8, 0  ;;  %p366_p12 = pnand %p365_p11, %p482_p5  ;;  %s428_s21 = smov [#allocation2]  }
  0x18   : > { %v166_v2 = vsel %vm165_vm0, %v155_v1, -inf  ;;  %v156_v3 = vld [vmem:[%s154_s28] sm:$0xff]  ;;  %s368_s22 = sshll.u32 %s428_s21, 4  ;;  %s369_s22 = int_to_ptr.vmem [resolvable:$false] %s368_s22 }
  0x19   : > { %167 = vmax.xlane.f32.xlu0 %v166_v2  ;;  %vm162_vm2 = vcmp.ne.s32.totalorder %v156_v3, 4294967196  ;;  %vm163_vm3 = vcmp.lt.s32.totalorder %v161_v20, 13  ;;  %p367_p13 = pneg %p366_p12  ;;  %s370_s23 = scalar_lea.vmem %s369_s22, 32 }
  0x1a   : > { %vm164_vm4 = vmand %vm162_vm2, %vm163_vm3  ;;  %p371_p0 = scmp.lt.s32.totalorder %s236_s6, %s369_s22  ;;  %p372_p1 = scmp.lt.s32.totalorder %s370_s23, %s364_s13 }
  0x1b   : > { %v310_v21 = vsel %vm164_vm4, 1.0, %v427_v10 }
  0x1c   : > { %v206_v29 = vsel %vm193_vm5, %v310_v21, 0.0  ;;  %p373_p2 = por %p372_p1, %p371_p0 }
  0x1e   : > { %p374_p3 = pnand %p373_p2, %p367_p13 }
  0x2f   : > { %180 = vperm.xlu0 %359, %v156_v3  }
  0xa2   : > { %v168_v4 = vpop.xlane.xlu0 %167 }
  0xa3   : > { %v169_v5 = vsub.f32 %v155_v1, %v168_v4 }
  0xa5   : > { %v170_v7 = vmul.f32 1.442695, %v169_v5 }
  0xa7   : > { %360 = vpow2.f32 %v170_v7 }
  0xaa   : > { %v181_v9 = vpop.permute.xlu0 %180 }
  0xab   : > { %vm182_vm1 = vcmp.eq.s32.totalorder %v501_v8, %v181_v9 }
  0xac   : > { %v309_v11 = vsel %vm182_vm1, 1.0, %v427_v10 }
  0xad   : > { %v185_v12 = vmul.f32 0.9, %v309_v11 }
  0xaf   : > { %v186_v13 = vadd.f32 0.003125, %v185_v12 }
  0xb1   : > { %v187_v16 = vmul.f32 %v186_v13, %v169_v5 }
  0xb3   : > { %v188_v17 = vsel %vm165_vm0, %v187_v16, 0.0 }
  0xb4   : > { %v361_v14 = vpop.eup %360 }
  0xb5   : > { %v172_v15 = vsel %vm165_vm0, %v361_v14, 0.0 }
  0xb6   : > { %173 = vadd.xlane.f32.xlu1 %v172_v15 }
  0xba   : > { %189 = vadd.xlane.f32.xlu1 %v188_v17 }
 0x13f   : > { %v174_v22 = vpop.xlane.xlu1 %173 }
 0x140   : > { %362 = vlog2.f32 %v174_v22 }
 0x143   : > { %v190_v25 = vpop.xlane.xlu1 %189 }
 0x14d   : > { %v363_v23 = vpop.eup %362 }
 0x14e   : > { %v176_v24 = vmul.f32 0.6931472, %v363_v23 }
 0x150   : > { %v191_v26 = vsub.f32 %v176_v24, %v190_v25 }
 0x152   : > { %v192_v27 = vsel %vm164_vm4, %v191_v26, 0.0 }
 0x153   : > { %v194_v28 = vsel %vm193_vm5, %v192_v27, 0.0 }
 0x154   : > { %195 = vadd.xlane.f32.xlu1 %v194_v28 }
 0x158   : > { %207 = vadd.xlane.f32.xlu1 %v206_v29 }
 0x1dd   : > { %v196_v30 = vpop.xlane.xlu1 %195 }
 0x1de   : > { %v197_v31 = vrot.slane %v196_v30, 4 }
 0x1e0   : > { %v198_v32 = vadd.f32 %v197_v31, %v196_v30 }
 0x1e1   : > { %v208_v33 = vpop.xlane.xlu1 %207 }
 0x1e2   : > { %v199_v34 = vrot.slane %v198_v32, 2  ;;  %v209_v35 = vrot.slane %v208_v33, 4 }
 0x1e4   : > { %v210_v36 = vadd.f32 %v209_v35, %v208_v33  ;;  %v200_v37 = vadd.f32 %v199_v34, %v198_v32 }
 0x1e6   : > { %v211_v38 = vrot.slane %v210_v36, 2  ;;  %v201_v39 = vrot.slane %v200_v37, 1 }
 0x1e8   : > { %v212_v40 = vadd.f32 %v211_v38, %v210_v36  ;;  %v202_v41 = vadd.f32 %v201_v39, %v200_v37 }
 0x1ea   : > { %314 = vpush %v202_v41  ;;  %v213_v42 = vrot.slane %v212_v40, 1 }
 0x1ec   : > { %v214_v43 = vadd.f32 %v213_v42, %v212_v40 }
 0x1ee   : > { %316 = vpush %v214_v43 }
 0x21b   : > { %s315_s4 = spop %314 }
 0x21c   : > { %v217_v44 = vstv %s315_s4 }
 0x21f   : > { %s317_s7 = spop %316 }
 0x220   : > { %v218_v45 = vstv %s317_s7 }
 0x221   : > { %v219_v46 = vsel %vm216_vm6, %v217_v44, %v218_v45 }
 0x222   : > { %221 = vst.msk [vmem:[%s146_s5] sm:$0x1] %vm220_vm7, %v219_v46 }
 0x223   : > { %377 = shalt.err (!%p374_p3)
}
 0x224   : > { %s378_s24 = scalar_lea.hbm %s513_s16, 16  ;;  %s382_s27 = scalar_lea.hbm %s550_s2, 32 }
 0x225   : > { %p379_p4 = scmp.ne.s32.totalorder %s513_s16, %s378_s24  ;;  %p383_p9 = scmp.lt.s32.totalorder %s513_s16, %s550_s2 }
 0x226   : > { %p384_p10 = scmp.lt.s32.totalorder %s382_s27, %s378_s24 }
 0x227   : > { %p380_p7 = pnand %p379_p4, %p482_p5 }
 0x228   : > { %p385_p11 = por %p384_p10, %p383_p9 }
 0x229   : > { %p381_p8 = pneg %p380_p7 }
 0x22b   : > { %p386_p12 = pnand %p385_p11, %p381_p8 }
 0x22d   : > { %389 = shalt.err (!%p386_p12)
}
 0x22e   : > { %318 = dma.vmem_to_hbm [thread:$0]  (%p482_p5), %s236_s6, 16, %s513_s16, %s223_s17  }
 0x22f PF: > { %p324_p13 = scmp.ge.s32.totalorder %s424_s12, 2  ;;  %s247_s30 = sand.u32 1, %s412_s9  }
 0x230   : > { %s248_s3 = scalar_lea.sflag [#allocation3], %s247_s30 }
 0x231   : > { %p321_p0 = pnand %p324_p13, %p486_p6 }
 0x233   : > { %p322_p1 = pneg %p321_p0 }
 0x235   : > { %407 = dma.done.wait (%p322_p1), %s248_s3, 16  }
 0x236   : > { %409 = vsyncadd (%p322_p1), %s248_s3, 4294967280  ;;  %p12_p2 = scmp.ge.s32.totalorder %s469_s15, 4   ;;  %s553_s9 = smov %s416_s10 }
 0x237   : > { %s554_s10 = smov %s420_s11  ;;  %s555_s11 = smov %s480_s18 }
 0x238   : > { %s556_s12 = smov %s469_s15  ;;  %14 = sbr.rel (!%p12_p2) target bundleno = 3 (0x3), region = 66 }
 0x23d   :  { %252 = vsyncpa [#allocation3], 1 }
 0x23e   :  { %254 = vsyncpa [#allocation3 + $0x1], 1 }

</bundles_post_ra>
